<compile_context>
chip_gen: v5e
topology: v5e:2x2
jax: 0.10.0
libtpu: 0.0.40
codegen_flags: <defaults>
</compile_context>

<pallas_src>
import math
import functools

import jax
import jax.numpy as jnp
from jax.experimental import pallas as pl
from jax.experimental.pallas import tpu as pltpu


# ----------------------------------------------------------------------------- utils

def _layernorm(v, g, b, eps=1e-5):
    mu = jnp.mean(v, axis=-1, keepdims=True)
    var = jnp.mean((v - mu) ** 2, axis=-1, keepdims=True)
    return (v - mu) * jax.lax.rsqrt(var + eps) * g + b


def sinusoidal_pos_emb(seq_len, dim):
    """MulT/fairseq-style sinusoidal embedding, [sin | cos] layout.

    MulT's SinusoidalPositionalEmbedding uses padding_idx=0, so real positions
    start at 1.  (If the reference uses padding_idx=1, shift positions by +1.)
    """
    half = dim // 2
    emb = math.log(10000.0) / (half - 1)
    freqs = jnp.exp(jnp.arange(half, dtype=jnp.float32) * -emb)
    pos = jnp.arange(1, seq_len + 1, dtype=jnp.float32)
    ang = pos[:, None] * freqs[None, :]
    pe = jnp.concatenate([jnp.sin(ang), jnp.cos(ang)], axis=1)
    if dim % 2 == 1:
        pe = jnp.concatenate([pe, jnp.zeros((seq_len, 1), jnp.float32)], axis=1)
    return pe  # (S, H)


def _round_up(x, m):
    return (x + m - 1) // m * m


def _choose_tile(n, cap):
    """Largest power-of-two tile <= cap that divides n (else the full extent)."""
    t = cap
    while t >= 8:
        if t <= n and n % t == 0:
            return t
        t //= 2
    return n


def _vmem_limit(bytes_est):
    return int(min(max(bytes_est + (4 << 20), 16 << 20), 64 << 20))


# ------------------------------------------------------------------- Pallas kernels

def kv_proj_kernel(xk_ref, xv_ref, ln0g_ref, ln0b_ref,
                   wk_ref, bk_ref, wv_ref, bv_ref,
                   k_out_ref, v_out_ref):
    """Pre-LN K/V projection for one (layer, row-tile) grid step.

    xk/xv blocks are (TR, H) row tiles of the flattened (B*S, H) key/value
    streams; weights are the per-layer Wk/Wv (bf16).  Outputs bf16.
    """
    g = ln0g_ref[0]                       # (1, H)
    b = ln0b_ref[0]
    k_in = _layernorm(xk_ref[...], g, b)  # f32 LayerNorm
    v_in = _layernorm(xv_ref[...], g, b)
    k = jnp.dot(k_in.astype(jnp.bfloat16), wk_ref[0],
                preferred_element_type=jnp.float32) + bk_ref[0]
    v = jnp.dot(v_in.astype(jnp.bfloat16), wv_ref[0],
                preferred_element_type=jnp.float32) + bv_ref[0]
    k_out_ref[0] = k.astype(jnp.bfloat16)
    v_out_ref[0] = v.astype(jnp.bfloat16)


def layer_kernel(xq_ref, k_ref, v_ref,
                 ln0g_ref, ln0b_ref, wq_ref, bq_ref, wo_ref, bo_ref,
                 ln1g_ref, ln1b_ref, w1_ref, b1_ref, w2_ref, b2_ref,
                 lnfg_ref, lnfb_ref,
                 out_ref,
                 q_sc,
                 *, num_heads, apply_final_ln):
    """One pre-LN cross-attention layer for a (batch, query-tile) grid step."""
    x = xq_ref[0]                          # (TQ, H)   f32 query-stream tile
    k3 = k_ref[0, 0]                       # (nh, S, hd) bf16 (precomputed, head-major)
    v3 = v_ref[0, 0]
    TQ, H = x.shape
    hd = H // num_heads
    scale = hd ** -0.5

    # ---- Q projection (pre-LN), full-H contraction on the MXU ----
    q_in = _layernorm(x, ln0g_ref[0], ln0b_ref[0])
    q = jnp.dot(q_in.astype(jnp.bfloat16), wq_ref[0],
                preferred_element_type=jnp.float32) + bq_ref[0]
    q = q * scale                          # (TQ, H) f32

    # split heads through a tiny VMEM scratch (no lane-splitting reshape needed)
    for h in range(num_heads):
        q_sc[h] = q[:, h * hd:(h + 1) * hd].astype(jnp.bfloat16)
    qh = q_sc[...]                         # (nh, TQ, hd) bf16

    # ---- batched multi-head attention: one einsum per matmul over all heads ----
    scores = jnp.einsum("hqd,hkd->hqk", qh, k3,
                        preferred_element_type=jnp.float32)      # (nh, TQ, S) f32
    scores = scores - jnp.max(scores, axis=-1, keepdims=True)
    p = jnp.exp(scores)
    p = p * pl.reciprocal(jnp.sum(p, axis=-1, keepdims=True), approx=True)
    ctx = jnp.einsum("hqk,hkd->hqd", p.astype(jnp.bfloat16), v3,
                     preferred_element_type=jnp.float32)         # (nh, TQ, hd) f32

    # merge heads by accumulating per-head slices of the output projection
    # (avoids a lane-axis concat entirely)
    wo = wo_ref[0]                         # (H, H) bf16
    attn = bo_ref[0]                       # (1, H) f32, broadcasts up
    for h in range(num_heads):
        attn = attn + jnp.dot(ctx[h].astype(jnp.bfloat16),
                              wo[h * hd:(h + 1) * hd, :],
                              preferred_element_type=jnp.float32)

    x = x + attn                                                  # residual 1

    # ---- position-wise FFN (pre-LN, ReLU, 4*H) ----
    h1 = _layernorm(x, ln1g_ref[0], ln1b_ref[0])
    h1 = jnp.dot(h1.astype(jnp.bfloat16), w1_ref[0],
                 preferred_element_type=jnp.float32) + b1_ref[0]
    h1 = jnp.maximum(h1, 0.0)
    h2 = jnp.dot(h1.astype(jnp.bfloat16), w2_ref[0],
                 preferred_element_type=jnp.float32) + b2_ref[0]
    x = x + h2                                                    # residual 2

    if apply_final_ln:                     # fused final encoder LayerNorm
        x = _layernorm(x, lnfg_ref[...], lnfb_ref[...])
    out_ref[0] = x


# -------------------------------------------------------------------------- wrappers

def run_kv_proj(xk, xv, params, num_heads):
    """K/V (LN + Wk/Wv) for ALL layers in one pallas_call, row-tiled over B*S."""
    B, S, H = xk.shape
    L = params["wk"].shape[0]
    hd = H // num_heads

    rows = B * S
    TR = min(256, _round_up(rows, 8))
    rows_p = _round_up(rows, TR)
    xk2 = xk.reshape(rows, H)
    xv2 = xv.reshape(rows, H)
    if rows_p != rows:
        pad = ((0, rows_p - rows), (0, 0))
        xk2 = jnp.pad(xk2, pad)
        xv2 = jnp.pad(xv2, pad)
    RT = rows_p // TR

    def rows_map(l, r): return (r, 0)
    def p3_map(l, r): return (l, 0, 0)
    def out_map(l, r): return (l, r, 0)

    bytes_est = 2 * (2 * TR * H * 4 + 2 * TR * H * 2
                     + 2 * H * H * 2 + 4 * H * 4) + 8 * TR * H * 4

    k_all, v_all = pl.pallas_call(
        kv_proj_kernel,
        out_shape=(jax.ShapeDtypeStruct((L, rows_p, H), jnp.bfloat16),
                   jax.ShapeDtypeStruct((L, rows_p, H), jnp.bfloat16)),
        grid=(L, RT),
        in_specs=[
            pl.BlockSpec((TR, H), rows_map),      # xk rows
            pl.BlockSpec((TR, H), rows_map),      # xv rows
            pl.BlockSpec((1, 1, H), p3_map),      # ln0 gamma (per layer)
            pl.BlockSpec((1, 1, H), p3_map),      # ln0 beta
            pl.BlockSpec((1, H, H), p3_map),      # Wk (bf16)
            pl.BlockSpec((1, 1, H), p3_map),      # bk
            pl.BlockSpec((1, H, H), p3_map),      # Wv (bf16)
            pl.BlockSpec((1, 1, H), p3_map),      # bv
        ],
        out_specs=(pl.BlockSpec((1, TR, H), out_map),
                   pl.BlockSpec((1, TR, H), out_map)),
        compiler_params=pltpu.CompilerParams(
            dimension_semantics=("parallel", "parallel"),
            vmem_limit_bytes=_vmem_limit(bytes_est)),
    )(xk2, xv2, params["ln0_g"], params["ln0_b"],
      params["wk"], params["bk"], params["wv"], params["bv"])

    # wrapper-side layout plumbing: head-major (L, B, nh, S, hd) bf16
    k_all = k_all[:, :rows].reshape(L, B, S, num_heads, hd).transpose(0, 1, 3, 2, 4)
    v_all = v_all[:, :rows].reshape(L, B, S, num_heads, hd).transpose(0, 1, 3, 2, 4)
    return k_all, v_all


def run_layer(x, k_all, v_all, params, layer_idx, num_heads, apply_final_ln):
    B, S, H = x.shape
    L, _, F = params["w1"].shape
    hd = H // num_heads
    l = layer_idx

    TQ = _choose_tile(S, 256)
    NQT = S // TQ

    def act_map(b, qt): return (b, qt, 0)
    def kv_map(b, qt): return (l, b, 0, 0, 0)
    def p3_map(b, qt): return (l, 0, 0)
    def lnf_map(b, qt): return (0, 0)

    bytes_est = (2 * (2 * TQ * H * 4                    # x in + out (f32)
                      + 2 * num_heads * S * hd * 2      # K + V (bf16)
                      + (2 * H * H + 2 * H * F) * 2     # Wq, Wo, W1, W2 (bf16)
                      + (6 * H + F) * 4)                # LN params + biases
                 + 3 * num_heads * TQ * S * 4           # scores / p live
                 + TQ * F * 4 + 8 * TQ * H * 4)         # FFN + misc temporaries

    return pl.pallas_call(
        functools.partial(layer_kernel, num_heads=num_heads,
                          apply_final_ln=apply_final_ln),
        out_shape=jax.ShapeDtypeStruct((B, S, H), jnp.float32),
        grid=(B, NQT),
        in_specs=[
            pl.BlockSpec((1, TQ, H), act_map),                   # x (query stream)
            pl.BlockSpec((1, 1, num_heads, S, hd), kv_map),      # K (head-major bf16)
            pl.BlockSpec((1, 1, num_heads, S, hd), kv_map),      # V
            pl.BlockSpec((1, 1, H), p3_map),                     # ln0 gamma
            pl.BlockSpec((1, 1, H), p3_map),                     # ln0 beta
            pl.BlockSpec((1, H, H), p3_map),                     # Wq (bf16)
            pl.BlockSpec((1, 1, H), p3_map),                     # bq
            pl.BlockSpec((1, H, H), p3_map),                     # Wo (bf16)
            pl.BlockSpec((1, 1, H), p3_map),                     # bo
            pl.BlockSpec((1, 1, H), p3_map),                     # ln1 gamma
            pl.BlockSpec((1, 1, H), p3_map),                     # ln1 beta
            pl.BlockSpec((1, H, F), p3_map),                     # W1 (bf16)
            pl.BlockSpec((1, 1, F), p3_map),                     # b1
            pl.BlockSpec((1, F, H), p3_map),                     # W2 (bf16)
            pl.BlockSpec((1, 1, H), p3_map),                     # b2
            pl.BlockSpec((1, H), lnf_map),                       # final LN gamma
            pl.BlockSpec((1, H), lnf_map),                       # final LN beta
        ],
        out_specs=pl.BlockSpec((1, TQ, H), act_map),
        scratch_shapes=[pltpu.VMEM((num_heads, TQ, hd), jnp.bfloat16)],
        compiler_params=pltpu.CompilerParams(
            dimension_semantics=("parallel", "parallel"),
            vmem_limit_bytes=_vmem_limit(bytes_est)),
    )(x, k_all, v_all,
      params["ln0_g"], params["ln0_b"], params["wq"], params["bq"],
      params["wo"], params["bo"], params["ln1_g"], params["ln1_b"],
      params["w1"], params["b1"], params["w2"], params["b2"],
      params["lnf_g"], params["lnf_b"])


def trans_encoder_forward(x_q, x_k, x_v, params, num_heads):
    """Equivalent of Trans_Encoder.forward: returns (B, S, H) float32."""
    B, S, H = x_q.shape
    L = params["wq"].shape[0]
    assert H % num_heads == 0, "hidden size must be divisible by num_heads"

    embed_scale = math.sqrt(H)
    pe = sinusoidal_pos_emb(S, H)[None]          # (1, S, H) glue in plain JAX
    xq = embed_scale * x_q + pe
    xk = embed_scale * x_k + pe
    xv = embed_scale * x_v + pe

    # K/V depend only on xk/xv and per-layer weights: hoist for all layers at once.
    k_all, v_all = run_kv_proj(xk, xv, params, num_heads)   # (L, B, nh, S, hd) bf16

    x = xq
    for l in range(L):
        x = run_layer(x, k_all, v_all, params, l, num_heads,
                      apply_final_ln=(l == L - 1))
    return x


# ------------------------------------------------------------------- parameter init

def init_params(key, hidden_size, num_layers):
    H, F, L = hidden_size, 4 * hidden_size, num_layers
    ks = jax.random.split(key, 12)

    def w(k, shape):   # weights stored bf16 (half DMA bytes / VMEM), matmul accumulates f32
        return (0.02 * jax.random.normal(k, shape, jnp.float32)).astype(jnp.bfloat16)

    def b(k, shape):   # biases / LN params stay f32
        return 0.01 * jax.random.normal(k, shape, jnp.float32)

    return {
        "ln0_g": jnp.ones((L, 1, H), jnp.float32),
        "ln0_b": jnp.zeros((L, 1, H), jnp.float32),
        "wq": w(ks[0], (L, H, H)), "bq": b(ks[1], (L, 1, H)),
        "wk": w(ks[2], (L, H, H)), "bk": b(ks[3], (L, 1, H)),
        "wv": w(ks[4], (L, H, H)), "bv": b(ks[5], (L, 1, H)),
        "wo": w(ks[6], (L, H, H)), "bo": b(ks[7], (L, 1, H)),
        "ln1_g": jnp.ones((L, 1, H), jnp.float32),
        "ln1_b": jnp.zeros((L, 1, H), jnp.float32),
        "w1": w(ks[8], (L, H, F)), "b1": b(ks[9], (L, 1, F)),
        "w2": w(ks[10], (L, F, H)), "b2": b(ks[11], (L, 1, H)),
        "lnf_g": jnp.ones((1, H), jnp.float32),
        "lnf_b": jnp.zeros((1, H), jnp.float32),
    }


# ------------------------------------------------------------------------------ main

if __name__ == "__main__":
    B, S, H = 2, 8, 128        # H a multiple of 128 -> lane-dense blocks end to end
    NUM_HEADS = 4
    NUM_LAYERS = 2

    key = jax.random.PRNGKey(0)
    kq, kk, kv, kp = jax.random.split(key, 4)
    x_q = jax.random.normal(kq, (B, S, H), jnp.float32)
    x_k = jax.random.normal(kk, (B, S, H), jnp.float32)
    x_v = jax.random.normal(kv, (B, S, H), jnp.float32)

    params = init_params(kp, H, NUM_LAYERS)

    # TODO(synk): project_m + Trans_Pooler are only used by the unimodal/multimodal
    # feature helpers, not by Trans_Encoder.forward, so they are not kernelized.
    out = trans_encoder_forward(x_q, x_k, x_v, params, NUM_HEADS)
    out = jax.block_until_ready(out)
    assert out.shape == (B, S, H) and out.dtype == jnp.float32
    assert bool(jnp.all(jnp.isfinite(out)))
    print("KERNEL_OK")
</pallas_src>

<mosaic_0001>
module attributes {stable_mosaic.version = 11 : i64} {
  func.func @kv_proj_kernel(%arg0: i32, %arg1: i32, %arg2: memref<16x128xf32, #tpu.memory_space<vmem>>, %arg3: memref<16x128xf32, #tpu.memory_space<vmem>>, %arg4: memref<1x1x128xf32, #tpu.memory_space<vmem>>, %arg5: memref<1x1x128xf32, #tpu.memory_space<vmem>>, %arg6: memref<1x128x128xbf16, #tpu.memory_space<vmem>>, %arg7: memref<1x1x128xf32, #tpu.memory_space<vmem>>, %arg8: memref<1x128x128xbf16, #tpu.memory_space<vmem>>, %arg9: memref<1x1x128xf32, #tpu.memory_space<vmem>>, %arg10: memref<1x16x128xbf16, #tpu.memory_space<vmem>>, %arg11: memref<1x16x128xbf16, #tpu.memory_space<vmem>>) attributes {dimension_semantics = [#tpu.dimension_semantics<parallel>, #tpu.dimension_semantics<parallel>], iteration_bounds = array<i64: 2, 1>, scalar_prefetch = 0 : i64, scratch_operands = 0 : i64, tpu.core_type = #tpu.core_type<tc>, window_params = [{transform_indices = @transform_0, window_bounds = array<i64: 16, 128>}, {transform_indices = @transform_1, window_bounds = array<i64: 16, 128>}, {transform_indices = @transform_2, window_bounds = array<i64: 1, 1, 128>}, {transform_indices = @transform_3, window_bounds = array<i64: 1, 1, 128>}, {transform_indices = @transform_4, window_bounds = array<i64: 1, 128, 128>}, {transform_indices = @transform_5, window_bounds = array<i64: 1, 1, 128>}, {transform_indices = @transform_6, window_bounds = array<i64: 1, 128, 128>}, {transform_indices = @transform_7, window_bounds = array<i64: 1, 1, 128>}, {transform_indices = @transform_8, window_bounds = array<i64: 1, 16, 128>}, {transform_indices = @transform_9, window_bounds = array<i64: 1, 16, 128>}]} {
    %c0 = arith.constant 0 : index
    %c0_0 = arith.constant 0 : index
    %c0_1 = arith.constant 0 : index
    %0 = vector.load %arg4[%c0, %c0_0, %c0_1] : memref<1x1x128xf32, #tpu.memory_space<vmem>>, vector<1x1x128xf32>
    %1 = vector.shape_cast %0 : vector<1x1x128xf32> to vector<1x128xf32>
    %c0_2 = arith.constant 0 : index
    %c0_3 = arith.constant 0 : index
    %c0_4 = arith.constant 0 : index
    %2 = vector.load %arg5[%c0_2, %c0_3, %c0_4] : memref<1x1x128xf32, #tpu.memory_space<vmem>>, vector<1x1x128xf32>
    %3 = vector.shape_cast %2 : vector<1x1x128xf32> to vector<1x128xf32>
    %c0_5 = arith.constant 0 : index
    %c0_6 = arith.constant 0 : index
    %4 = vector.load %arg2[%c0_5, %c0_6] : memref<16x128xf32, #tpu.memory_space<vmem>>, vector<16x128xf32>
    %cst = arith.constant dense<0.000000e+00> : vector<16xf32>
    %5 = vector.multi_reduction <add>, %4, %cst [1] : vector<16x128xf32> to vector<16xf32>
    %6 = vector.shape_cast %5 : vector<16xf32> to vector<16x1xf32>
    %cst_7 = arith.constant 1.280000e+02 : f32
    %7 = vector.broadcast %cst_7 : f32 to vector<16x1xf32>
    %8 = arith.divf %6, %7 : vector<16x1xf32>
    %9 = vector.broadcast %8 : vector<16x1xf32> to vector<16x128xf32>
    %10 = arith.subf %4, %9 : vector<16x128xf32>
    %11 = arith.mulf %10, %10 : vector<16x128xf32>
    %cst_8 = arith.constant dense<0.000000e+00> : vector<16xf32>
    %12 = vector.multi_reduction <add>, %11, %cst_8 [1] : vector<16x128xf32> to vector<16xf32>
    %13 = vector.shape_cast %12 : vector<16xf32> to vector<16x1xf32>
    %cst_9 = arith.constant 1.280000e+02 : f32
    %14 = vector.broadcast %cst_9 : f32 to vector<16x1xf32>
    %15 = arith.divf %13, %14 : vector<16x1xf32>
    %16 = vector.broadcast %8 : vector<16x1xf32> to vector<16x128xf32>
    %17 = arith.subf %4, %16 : vector<16x128xf32>
    %cst_10 = arith.constant 9.99999974E-6 : f32
    %18 = vector.broadcast %cst_10 : f32 to vector<16x1xf32>
    %19 = arith.addf %15, %18 : vector<16x1xf32>
    %20 = math.rsqrt %19 : vector<16x1xf32>
    %21 = vector.broadcast %20 : vector<16x1xf32> to vector<16x128xf32>
    %22 = arith.mulf %17, %21 : vector<16x128xf32>
    %23 = vector.broadcast %1 : vector<1x128xf32> to vector<16x128xf32>
    %24 = arith.mulf %22, %23 : vector<16x128xf32>
    %25 = vector.broadcast %3 : vector<1x128xf32> to vector<16x128xf32>
    %26 = arith.addf %24, %25 : vector<16x128xf32>
    %c0_11 = arith.constant 0 : index
    %c0_12 = arith.constant 0 : index
    %27 = vector.load %arg3[%c0_11, %c0_12] : memref<16x128xf32, #tpu.memory_space<vmem>>, vector<16x128xf32>
    %cst_13 = arith.constant dense<0.000000e+00> : vector<16xf32>
    %28 = vector.multi_reduction <add>, %27, %cst_13 [1] : vector<16x128xf32> to vector<16xf32>
    %29 = vector.shape_cast %28 : vector<16xf32> to vector<16x1xf32>
    %cst_14 = arith.constant 1.280000e+02 : f32
    %30 = vector.broadcast %cst_14 : f32 to vector<16x1xf32>
    %31 = arith.divf %29, %30 : vector<16x1xf32>
    %32 = vector.broadcast %31 : vector<16x1xf32> to vector<16x128xf32>
    %33 = arith.subf %27, %32 : vector<16x128xf32>
    %34 = arith.mulf %33, %33 : vector<16x128xf32>
    %cst_15 = arith.constant dense<0.000000e+00> : vector<16xf32>
    %35 = vector.multi_reduction <add>, %34, %cst_15 [1] : vector<16x128xf32> to vector<16xf32>
    %36 = vector.shape_cast %35 : vector<16xf32> to vector<16x1xf32>
    %cst_16 = arith.constant 1.280000e+02 : f32
    %37 = vector.broadcast %cst_16 : f32 to vector<16x1xf32>
    %38 = arith.divf %36, %37 : vector<16x1xf32>
    %39 = vector.broadcast %31 : vector<16x1xf32> to vector<16x128xf32>
    %40 = arith.subf %27, %39 : vector<16x128xf32>
    %cst_17 = arith.constant 9.99999974E-6 : f32
    %41 = vector.broadcast %cst_17 : f32 to vector<16x1xf32>
    %42 = arith.addf %38, %41 : vector<16x1xf32>
    %43 = math.rsqrt %42 : vector<16x1xf32>
    %44 = vector.broadcast %43 : vector<16x1xf32> to vector<16x128xf32>
    %45 = arith.mulf %40, %44 : vector<16x128xf32>
    %46 = vector.broadcast %1 : vector<1x128xf32> to vector<16x128xf32>
    %47 = arith.mulf %45, %46 : vector<16x128xf32>
    %48 = vector.broadcast %3 : vector<1x128xf32> to vector<16x128xf32>
    %49 = arith.addf %47, %48 : vector<16x128xf32>
    %50 = arith.truncf %26 : vector<16x128xf32> to vector<16x128xbf16>
    %c0_18 = arith.constant 0 : index
    %c0_19 = arith.constant 0 : index
    %c0_20 = arith.constant 0 : index
    %51 = vector.load %arg6[%c0_18, %c0_19, %c0_20] : memref<1x128x128xbf16, #tpu.memory_space<vmem>>, vector<1x128x128xbf16>
    %52 = vector.shape_cast %51 : vector<1x128x128xbf16> to vector<128x128xbf16>
    %cst_21 = arith.constant dense<0.000000e+00> : vector<16x128xf32>
    %53 = tpu.matmul %50, %52, %cst_21 {dimension_numbers = #tpu.dot_dimension_numbers<[1], [0], [0], [1], [0, 0, 1, 1], [], []>} : vector<16x128xbf16>, vector<128x128xbf16>, vector<16x128xf32> -> vector<16x128xf32>
    %c0_22 = arith.constant 0 : index
    %c0_23 = arith.constant 0 : index
    %c0_24 = arith.constant 0 : index
    %54 = vector.load %arg7[%c0_22, %c0_23, %c0_24] : memref<1x1x128xf32, #tpu.memory_space<vmem>>, vector<1x1x128xf32>
    %55 = vector.shape_cast %54 : vector<1x1x128xf32> to vector<1x128xf32>
    %56 = vector.broadcast %55 : vector<1x128xf32> to vector<16x128xf32>
    %57 = arith.addf %53, %56 : vector<16x128xf32>
    %58 = arith.truncf %49 : vector<16x128xf32> to vector<16x128xbf16>
    %c0_25 = arith.constant 0 : index
    %c0_26 = arith.constant 0 : index
    %c0_27 = arith.constant 0 : index
    %59 = vector.load %arg8[%c0_25, %c0_26, %c0_27] : memref<1x128x128xbf16, #tpu.memory_space<vmem>>, vector<1x128x128xbf16>
    %60 = vector.shape_cast %59 : vector<1x128x128xbf16> to vector<128x128xbf16>
    %cst_28 = arith.constant dense<0.000000e+00> : vector<16x128xf32>
    %61 = tpu.matmul %58, %60, %cst_28 {dimension_numbers = #tpu.dot_dimension_numbers<[1], [0], [0], [1], [0, 0, 1, 1], [], []>} : vector<16x128xbf16>, vector<128x128xbf16>, vector<16x128xf32> -> vector<16x128xf32>
    %c0_29 = arith.constant 0 : index
    %c0_30 = arith.constant 0 : index
    %c0_31 = arith.constant 0 : index
    %62 = vector.load %arg9[%c0_29, %c0_30, %c0_31] : memref<1x1x128xf32, #tpu.memory_space<vmem>>, vector<1x1x128xf32>
    %63 = vector.shape_cast %62 : vector<1x1x128xf32> to vector<1x128xf32>
    %64 = vector.broadcast %63 : vector<1x128xf32> to vector<16x128xf32>
    %65 = arith.addf %61, %64 : vector<16x128xf32>
    %66 = arith.truncf %57 : vector<16x128xf32> to vector<16x128xbf16>
    %c0_32 = arith.constant 0 : index
    %c0_33 = arith.constant 0 : index
    %c0_34 = arith.constant 0 : index
    %67 = vector.load %arg10[%c0_32, %c0_33, %c0_34] : memref<1x16x128xbf16, #tpu.memory_space<vmem>>, vector<1x16x128xbf16>
    %68 = vector.shape_cast %67 : vector<1x16x128xbf16> to vector<16x128xbf16>
    %69 = vector.shape_cast %66 : vector<16x128xbf16> to vector<1x16x128xbf16>
    tpu.vector_store %arg10[%c0_32, %c0_33, %c0_34], %69 {strides = array<i32>} : memref<1x16x128xbf16, #tpu.memory_space<vmem>>, vector<1x16x128xbf16>,
    %70 = arith.truncf %65 : vector<16x128xf32> to vector<16x128xbf16>
    %c0_35 = arith.constant 0 : index
    %c0_36 = arith.constant 0 : index
    %c0_37 = arith.constant 0 : index
    %71 = vector.load %arg11[%c0_35, %c0_36, %c0_37] : memref<1x16x128xbf16, #tpu.memory_space<vmem>>, vector<1x16x128xbf16>
    %72 = vector.shape_cast %71 : vector<1x16x128xbf16> to vector<16x128xbf16>
    %73 = vector.shape_cast %70 : vector<16x128xbf16> to vector<1x16x128xbf16>
    tpu.vector_store %arg11[%c0_35, %c0_36, %c0_37], %73 {strides = array<i32>} : memref<1x16x128xbf16, #tpu.memory_space<vmem>>, vector<1x16x128xbf16>,
    return
  }
  func.func @transform_0(%arg0: i32, %arg1: i32) -> (i32, i32) {
    %c0_i32 = arith.constant 0 : i32
    %c0_i32_0 = arith.constant 0 : i32
    return %arg1, %c0_i32 : i32, i32
  }
  func.func @transform_1(%arg0: i32, %arg1: i32) -> (i32, i32) {
    %c0_i32 = arith.constant 0 : i32
    %c0_i32_0 = arith.constant 0 : i32
    return %arg1, %c0_i32 : i32, i32
  }
  func.func @transform_2(%arg0: i32, %arg1: i32) -> (i32, i32, i32) {
    %c0_i32 = arith.constant 0 : i32
    %c0_i32_0 = arith.constant 0 : i32
    %c0_i32_1 = arith.constant 0 : i32
    return %arg0, %c0_i32, %c0_i32_0 : i32, i32, i32
  }
  func.func @transform_3(%arg0: i32, %arg1: i32) -> (i32, i32, i32) {
    %c0_i32 = arith.constant 0 : i32
    %c0_i32_0 = arith.constant 0 : i32
    %c0_i32_1 = arith.constant 0 : i32
    return %arg0, %c0_i32, %c0_i32_0 : i32, i32, i32
  }
  func.func @transform_4(%arg0: i32, %arg1: i32) -> (i32, i32, i32) {
    %c0_i32 = arith.constant 0 : i32
    %c0_i32_0 = arith.constant 0 : i32
    %c0_i32_1 = arith.constant 0 : i32
    return %arg0, %c0_i32, %c0_i32_0 : i32, i32, i32
  }
  func.func @transform_5(%arg0: i32, %arg1: i32) -> (i32, i32, i32) {
    %c0_i32 = arith.constant 0 : i32
    %c0_i32_0 = arith.constant 0 : i32
    %c0_i32_1 = arith.constant 0 : i32
    return %arg0, %c0_i32, %c0_i32_0 : i32, i32, i32
  }
  func.func @transform_6(%arg0: i32, %arg1: i32) -> (i32, i32, i32) {
    %c0_i32 = arith.constant 0 : i32
    %c0_i32_0 = arith.constant 0 : i32
    %c0_i32_1 = arith.constant 0 : i32
    return %arg0, %c0_i32, %c0_i32_0 : i32, i32, i32
  }
  func.func @transform_7(%arg0: i32, %arg1: i32) -> (i32, i32, i32) {
    %c0_i32 = arith.constant 0 : i32
    %c0_i32_0 = arith.constant 0 : i32
    %c0_i32_1 = arith.constant 0 : i32
    return %arg0, %c0_i32, %c0_i32_0 : i32, i32, i32
  }
  func.func @transform_8(%arg0: i32, %arg1: i32) -> (i32, i32, i32) {
    %c0_i32 = arith.constant 0 : i32
    %c0_i32_0 = arith.constant 0 : i32
    return %arg0, %arg1, %c0_i32 : i32, i32, i32
  }
  func.func @transform_9(%arg0: i32, %arg1: i32) -> (i32, i32, i32) {
    %c0_i32 = arith.constant 0 : i32
    %c0_i32_0 = arith.constant 0 : i32
    return %arg0, %arg1, %c0_i32 : i32, i32, i32
  }
}

</mosaic_0001>

<bundles_post_ra>
// kernel: tpu_custom_call.1
= control target key start
LH: loop header
LB: loop body
LE: loop exit
PB: predicated region body
PF: predicated region fallthrough
CT: control target
= control target key end

     0   :  { %s1934_s0 = inlined_call_operand.hbm [shape: f32[16,128], index: 0, kind: input, shape index: {}]   ;;  %s1935_s1 = inlined_call_operand.hbm [shape: f32[16,128], index: 1, kind: input, shape index: {}]   ;;  %s1936_s2 = inlined_call_operand.hbm [shape: f32[2,1,128], index: 2, kind: input, shape index: {}]   ;;  %s1937_s3 = inlined_call_operand.vmem [shape: f32[2,1,128], index: 3, kind: input, shape index: {}]   ;;  %s1938_s4 = inlined_call_operand.hbm [shape: bf16[2,128,128], index: 4, kind: input, shape index: {}]   ;;  %s1939_s5 = inlined_call_operand.vmem [shape: f32[2,1,128], index: 5, kind: input, shape index: {}]   ;;  %s1940_s6 = inlined_call_operand.hbm [shape: bf16[2,128,128], index: 6, kind: input, shape index: {}]   ;;  %s1941_s7 = inlined_call_operand.vmem [shape: f32[2,1,128], index: 7, kind: input, shape index: {}]   ;;  %s1942_s8 = inlined_call_operand.hbm [shape: bf16[2,16,128], index: 8, kind: output, shape index: {0}]   ;;  %s1943_s9 = inlined_call_operand.hbm [shape: bf16[2,16,128], index: 9, kind: output, shape index: {1}]  }
   0x1   :  { %1957 = sst [smem:[#allocation26_spill]] %s1934_s0 }
   0x2   :  { %1958 = sst [smem:[#allocation27_spill]] %s1936_s2 }
   0x3   :  { %1959 = sst [smem:[#allocation28_spill]] %s1942_s8 }
   0x4   :  { %1960 = sst [smem:[#allocation29_spill]] %s1943_s9 }
   0x5   :  { %15 = vsyncpa [#allocation3], 0 }
   0x6   :  { %16 = vsyncpa [#allocation6], 0 }
   0x7   :  { %17 = vsyncpa [#allocation4], 0 }
   0x8   :  { %19 = vsyncpa [#allocation4 + $0x1], 0 }
   0x9   :  { %20 = vsyncpa [#allocation12], 0 }
   0xa   :  { %22 = vsyncpa [#allocation12 + $0x1], 0  ;;  %s1646_s30 = smov 0   ;;  %s1648_s10 = smov 0  }
   0xb   :  { %s1650_s11 = smov 0   ;;  %s1652_s12 = smov 0  }
   0xc   :  { %s1654_s13 = smov 0   ;;  %s1656_s14 = smov 0  }
   0xd LB: > { %1961 = sst [smem:[#allocation18_spill]] %s1565_s30  ;;  %s1677_s15 = sadd.s32 4294967295, %s1585_s14   ;;  %s1585_s14 = sphi %s1656_s14, %s28_s14   ;;  %s1581_s13 = sphi %s1654_s13, %s1990_s13   ;;  %s1577_s12 = sphi %s1652_s12, %s1989_s12   ;;  %s1573_s11 = sphi %s1650_s11, %s1988_s11   ;;  %s1569_s10 = sphi %s1648_s10, %s1992_s10   ;;  %s1565_s30 = sphi %s1646_s30, %s1991_s30  }
   0xe   : > { %1962 = sst [smem:[#allocation19_spill]] %s1573_s11  ;;  %s1074_s16 = sadd.s32 4294967294, %s1585_s14  }
   0xf   : > { %1963 = sst [smem:[#allocation20_spill]] %s1581_s13  ;;  %p112_p0 = scmp.ne.s32.totalorder %s1569_s10, %s1565_s30 }
  0x10   : > { %1964 = sst [smem:[#allocation21_spill]] %s1585_s14  ;;  %p113_p1 = scmp.eq.s32.totalorder %s1677_s15, 0 }
  0x11   : > { %p268_p2 = scmp.eq.s32.totalorder %s1677_s15, 1  ;;  %p274_p3 = scmp.eq.s32.totalorder %s1074_s16, 1 }
  0x12   : > { %p1686_p4 = por %p113_p1, %p112_p0  ;;  %p1075_p5 = scmp.ge.s32.totalorder %s1585_s14, 1 }
  0x13   : > { %p1691_p6 = por %p274_p3, %p112_p0  ;;  %p309_p7 = scmp.lt.s32.totalorder %s1585_s14, 3 }
  0x14   : > { %s1968_s0 = sld [smem:[#allocation26_spill]]  ;;  %s1587_s23 = smov [#allocation2]  }
  0x15   : > { %s1966_s18 = scalar_select %p1691_p6, 1, 0 }
  0x16   : > { %p1699_p8 = pnand %p1075_p5, %p309_p7  ;;  %s325_s24 = sshll.u32 %s1587_s23, 4  ;;  %s326_s24 = int_to_ptr.vmem [resolvable:$true] %s325_s24 }
  0x17   : > { %1967 = sst [smem:[#allocation22_spill]] %s1966_s18  ;;  %p1078_p11 = scmp.ge.s32.totalorder %s1585_s14, 2 }
  0x18   : > { %p1212_p9 = pneg %p1699_p8  ;;  %s1944_s26 = smov 128  }
  0x19   : > { %s1945_s27 = smov 8   ;;  %s40_s28 = sadd.s32 1, %s1581_s13 }
  0x1a   : > { %s323_s21 = sshll.u32 %s1968_s0, 4  ;;  %p1707_p10 = pnand %p1212_p9, %p113_p1  ;;  %s324_s21 = int_to_ptr.hbm [resolvable:$true] %s323_s21 }
  0x1b   : > { %p42_p12 = scmp.ge.s32.totalorder %s40_s28, 2  ;;  %s99_s29 = sadd.s32 1, %s1573_s11 }
  0x1c   : > { %1215 = dma.hbm_to_vmem [thread:$0]  (!%p1707_p10), %s324_s21, 256, %s326_s24, [#allocation3], %s1944_s26, %s1944_s26, %s1945_s27  }
  0x1d   : > { %p106_p13 = scmp.ne.s32.totalorder %s1573_s11, %s1569_s10  ;;  %p107_p0 = scmp.eq.s32.totalorder %s1585_s14, 0 }
  0x1e   : > { %s1994_s28 = smov (%p42_p12, %s40_s28), 0  ;;  %p1238_p7 = scmp.lt.s32.totalorder %s1585_s14, 2 }
  0x1f   : > { %1971 = sst [smem:[#allocation23_spill]] %s1994_s28  ;;  %p1724_p3 = por %p107_p0, %p106_p13 }
  0x20   : > { %p1730_p5 = por %p268_p2, %p106_p13  ;;  %s96_s20 = ssub.s32 %s1581_s13, %s1994_s28 }
  0x21   : > { %p97_p9 = scmp.eq.s32.totalorder %s96_s20, 0  ;;  %s356_s21 = sand.u32 1, %s1585_s14  }
  0x22   : > { %s1973_s19 = scalar_select %p1730_p5, 1, 0 }
  0x23   : > { %s358_s23 = sand.u32 1, %s1573_s11   ;;  %s1976_s2 = sld [smem:[#allocation27_spill]] }
  0x24   : > { %1974 = sst [smem:[#allocation24_spill]] %s1973_s19  ;;  %s359_s30 = scalar_lea.vmem [#allocation7], %s358_s23 }
  0x25   : > { %s1740_s24 = scalar_select %p97_p9, %s1573_s11, %s99_s29  }
  0x26   : > { %s366_s9 = sshll.u32 %s359_s30, 4  ;;  %p1748_p2 = pnand %p1238_p7, %p1724_p3  ;;  %s367_s9 = int_to_ptr.vmem [resolvable:$true] %s366_s9 }
  0x27   : > { %1975 = sst [smem:[#allocation25_spill]] %s1740_s24  ;;  %s1079_s20 = sshll.u32 %s358_s23, 6 }
  0x28   : > { %s383_s29 = scalar_lea.vmem [#allocation8], %s1079_s20  ;;  %s357_s24 = scalar_lea.sflag [#allocation3], %s356_s21 }
  0x29   : > { %s362_s0 = scalar_lea.hbm %s1976_s2, %s1581_s13  ;;  %s391_s28 = sshll.u32 %s383_s29, 4  ;;  %s392_s28 = int_to_ptr.vmem [resolvable:$true] %s391_s28 }
  0x2a   : > { %s364_s18 = sshll.u32 %s362_s0, 4  ;;  %s411_s26 = scalar_lea.vmem [#allocation9], %s1079_s20  ;;  %s365_s18 = int_to_ptr.hbm [resolvable:$true] %s364_s18 }
  0x2b   : > { %1222 = dma.hbm_to_vmem [thread:$0]  (!%p1748_p2), %s365_s18, 16, %s367_s9, %s357_s24  }
  0x2c   : > { %s419_s0 = sshll.u32 %s411_s26, 4  ;;  %s1164_s30 = sshll.u32 %s1581_s13, 6  ;;  %s420_s0 = int_to_ptr.vmem [resolvable:$true] %s419_s0 }
  0x2d   : > { %s388_s2 = scalar_lea.hbm %s1938_s4, %s1164_s30  ;;  %s340_s29 = sshll.u32 %s1935_s1, 4  ;;  %s341_s29 = int_to_ptr.hbm [resolvable:$true] %s340_s29 }
  0x2e   : > { %s389_s11 = sshll.u32 %s388_s2, 4  ;;  %s1590_s21 = smov 64   ;;  %s390_s11 = int_to_ptr.hbm [resolvable:$true] %s389_s11 }
  0x2f   : > { %s1591_s8 = smov 4   ;;  %s1592_s9 = smov [#allocation5]  }
  0x30   : > { %1225 = dma.hbm_to_vmem [thread:$0]  (!%p1748_p2), %s390_s11, 1024, %s392_s28, %s357_s24, %s1590_s21, %s1590_s21, %s1591_s8  }
  0x31   : > { %s342_s18 = sshll.u32 %s1592_s9, 4  ;;  %s416_s13 = scalar_lea.hbm %s1940_s6, %s1164_s30  ;;  %s343_s18 = int_to_ptr.vmem [resolvable:$true] %s342_s18 }
  0x32   : > { %s417_s27 = sshll.u32 %s416_s13, 4  ;;  %s1978_s2 = smov 8   ;;  %s418_s27 = int_to_ptr.hbm [resolvable:$true] %s417_s27 }
  0x33   : > { %s1979_s16 = smov 128   ;;  %437 = sbr.rel (%p1699_p8) target bundleno = 494 (0x1ee), region = 52 }
  0x34   : > { %1218 = dma.hbm_to_vmem [thread:$0]  (!%p1707_p10), %s341_s29, 256, %s343_s18, [#allocation6], %s1979_s16, %s1979_s16, %s1978_s2  }
  0x35   : > { %1228 = dma.hbm_to_vmem [thread:$0]  (!%p1748_p2), %s418_s27, 1024, %s420_s0, %s357_s24, %s1590_s21, %s1590_s21, %s1591_s8  }
  0x38   : > { %1544 = dma.done.wait (%p113_p1), [#allocation3], 256  }
  0x39   : > { %1546 = vsyncadd (%p113_p1), [#allocation3], 4294967040 }
  0x3a   : > { %1548 = dma.done.wait (%p113_p1), [#allocation6], 256  }
  0x3b   : > { %1550 = vsyncadd (%p113_p1), [#allocation6], 4294967040  ;;  %s449_s11 = sand.u32 1, %s1677_s15   ;;  %s1785_s8 = sand.u32 1, %s1569_s10  }
  0x3c   : > { %s450_s13 = scalar_lea.sflag [#allocation3], %s449_s11  ;;  %s452_s14 = scalar_lea.vmem [#allocation7], %s1785_s8 }
  0x3d   : > { %1552 = dma.done.wait (%p1686_p4), %s450_s13, 2064  }
  0x3e   : > { %1554 = vsyncadd (%p1686_p4), %s450_s13, 4294965232  ;;  %v605_v0 = vld [vmem:[#allocation5] sm:$0xff]  ;;  %v546_v1 = vld [vmem:[#allocation2] sm:$0xff]  ;;  %v1593_v4 = vmov 128.0   ;;  %p533_p1 = scmp.lt.s32.totalorder %s1577_s12, 1  ;;  %s1088_s0 = sshll.u32 %s1785_s8, 6 }
  0x3f   : > { %607 = vadd.xlane.f32.xlu1 %v605_v0  ;;  %548 = vadd.xlane.f32.xlu0 %v546_v1  ;;  %v606_v2 = vld [vmem:[#allocation5 + $0x8] sm:$0xff]  ;;  %v547_v3 = vld [vmem:[#allocation2 + $0x8] sm:$0xff]  ;;  %1303 = vrcp.f32 %v1593_v4  ;;  %s1827_s30 = scalar_lea.vmem [#allocation8], %s1088_s0  ;;  %s1830_s23 = scalar_lea.vmem [#allocation9], %s1088_s0 }
  0x40   : > { %s1816_s15 = scalar_select %p533_p1, %s1577_s12, 1  ;;  %v1173_v27 = vld [vmem:[%s1827_s30 + $0x38] sm:$0xff]  ;;  %v1172_v29 = vld [vmem:[%s1827_s30 + $0x30] sm:$0xff]  ;;  %v1171_v31 = vld [vmem:[%s1827_s30 + $0x28] sm:$0xff] }
  0x41   : > { %v1181_v28 = vld [vmem:[%s1830_s23 + $0x38] sm:$0xff]  ;;  %720 = vmatpush.bf16.msra.mxu0 %v1173_v27  ;;  %v1180_v30 = vld [vmem:[%s1830_s23 + $0x30] sm:$0xff]  ;;  %v1179_v32 = vld [vmem:[%s1830_s23 + $0x28] sm:$0xff]  ;;  %s1090_s26 = sshll.u32 %s1785_s8, 3  ;;  %s1182_s27 = sshll.u32 %s1577_s12, 3 }
  0x42   : > { %s535_s25 = scalar_lea.vmem %s1937_s3, %s1816_s15  ;;  %s538_s24 = scalar_lea.vmem %s1939_s5, %s1816_s15  ;;  %803 = vmatpush.bf16.msra.mxu1 %v1181_v28  ;;  %v1170_v33 = vld [vmem:[%s1827_s30 + $0x20] sm:$0xff]  ;;  %v1169_v35 = vld [vmem:[%s1827_s30 + $0x18] sm:$0xff]  ;;  %v1168_v37 = vld [vmem:[%s1827_s30 + $0x10] sm:$0xff] }
  0x43   : > { %v1178_v34 = vld [vmem:[%s1830_s23 + $0x20] sm:$0xff]  ;;  %v1177_v36 = vld [vmem:[%s1830_s23 + $0x18] sm:$0xff]  ;;  %v1176_v38 = vld [vmem:[%s1830_s23 + $0x10] sm:$0xff]  ;;  %s541_s20 = scalar_lea.vmem %s1941_s7, %s1816_s15  ;;  %s1980_s11 = sld [smem:[#allocation28_spill]] }
  0x44   : > { %v1167_v39 = vld [vmem:[%s1827_s30 + $0x8] sm:$0xff]  ;;  %v1166_v45 = vld [vmem:[%s1827_s30] sm:$0xff]  ;;  %s530_s19 = scalar_lea.vmem [#allocation11], %s1090_s26  ;;  %s1982_s29 = sld [smem:[#allocation29_spill]] }
  0x45   : > { %v1304_v5 = vpop.eup %1303  ;;  %721 = vmatpush.bf16.msra.mxu0 %v1172_v29  ;;  %v1175_v40 = vld [vmem:[%s1830_s23 + $0x8] sm:$0xff]  ;;  %v1174_v46 = vld [vmem:[%s1830_s23] sm:$0xff]  ;;  %s864_s0 = sshll.u32 %s530_s19, 4  ;;  %s1881_s0 = int_to_ptr.vmem [resolvable:$true] %s864_s0 }
  0x46   : > { %v553_v6 = vmul.f32 128.0, %v1304_v5  ;;  %vm557_vm0 = vweird.f32 %v1304_v5  ;;  %804 = vmatpush.bf16.msra.mxu1 %v1180_v30 }
  0x47   : > { %609 = vadd.xlane.f32.xlu1 %v606_v2  ;;  %550 = vadd.xlane.f32.xlu0 %v547_v3 }
  0x48   : > { %v554_v7 = vsub.f32 1.0, %v553_v6 }
  0x49   : > { %722 = vmatpush.bf16.msra.mxu0 %v1171_v31  ;;  %s1981_s17 = smov %s1980_s11  ;;  %s844_s13 = scalar_lea.hbm %s1980_s11, %s1182_s27 }
  0x4a   : > { %v555_v8 = vmul.f32 %v1304_v5, %v554_v7  ;;  %805 = vmatpush.bf16.msra.mxu1 %v1179_v32  ;;  %s863_s21 = scalar_lea.hbm %s1982_s29, %s1182_s27  ;;  %s847_s12 = sshll.u32 %s844_s13, 4  ;;  %s848_s12 = int_to_ptr.hbm [resolvable:$true] %s847_s12 }
  0x4b   : > { %s866_s15 = sshll.u32 %s863_s21, 4  ;;  %s1477_s18 = sshra.s32 %s848_s12, 4  ;;  %s1883_s15 = int_to_ptr.hbm [resolvable:$true] %s866_s15  ;;  %s1478_s18 = int_to_ptr.hbm [resolvable:$true] %s1477_s18 }
  0x4c   : > { %v556_v9 = vadd.f32 %v1304_v5, %v555_v8  ;;  %s1483_s2 = scalar_lea.hbm %s1981_s17, 16  ;;  %p1484_p12 = scmp.lt.s32.totalorder %s1478_s18, %s1981_s17 }
  0x4d   : > { %723 = vmatpush.bf16.msra.mxu0 %v1170_v33 }
  0x4e   : > { %v1792_v10 = vsel %vm557_vm0, %v1304_v5, %v556_v9  ;;  %806 = vmatpush.bf16.msra.mxu1 %v1178_v34 }
  0x51   : > { %724 = vmatpush.bf16.msra.mxu0 %v1169_v35 }
  0x52   : > { %807 = vmatpush.bf16.msra.mxu1 %v1177_v36 }
  0x55   : > { %725 = vmatpush.bf16.msra.mxu0 %v1168_v37  ;;  %v1302_v37 = vld [vmem:[%s541_s20] ss:$0 sm:$0xff]  ;;  %s1479_s20 = scalar_lea.hbm %s1478_s18, 8 }
  0x56   : > { %808 = vmatpush.bf16.msra.mxu1 %v1176_v38  ;;  %v1301_v38 = vld [vmem:[%s538_s24] ss:$0 sm:$0xff]  ;;  %s826_s24 = scalar_lea.sflag [#allocation4], %s1785_s8  ;;  %p1480_p4 = scmp.ne.s32.totalorder %s1478_s18, %s1479_s20 }
  0x57   : > { %p1485_p13 = scmp.lt.s32.totalorder %s1483_s2, %s1479_s20 }
  0x58   : > { %p1481_p8 = pnand %p1480_p4, %p1730_p5 }
  0x59   : > { %726 = vmatpush.bf16.msra.mxu0 %v1167_v39  ;;  %p1486_p0 = por %p1485_p13, %p1484_p12 }
  0x5a   : > { %809 = vmatpush.bf16.msra.mxu1 %v1175_v40  ;;  %p1482_p10 = pneg %p1481_p8 }
  0x5c   : > { %p1487_p3 = pnand %p1486_p0, %p1482_p10 }
  0x5d   : > { %727 = vmatpush.bf16.msra.mxu0 %v1166_v45 }
  0x5e   : > { %810 = vmatpush.bf16.msra.mxu1 %v1174_v46 }
  0xb2   : > { %v608_v11 = vpop.xlane.xlu1 %607  ;;  %v549_v12 = vpop.xlane.xlu0 %548 }
  0xb3   : > { %v611_v13 = vmul.f32 %v608_v11, %v1792_v10  ;;  %v559_v14 = vmul.f32 %v1792_v10, %v549_v12 }
  0xb5   : > { %v1796_v15 = vsub.f32 %v605_v0, %v611_v13  ;;  %v1798_v16 = vsub.f32 %v546_v1, %v559_v14 }
  0xb7   : > { %v615_v17 = vmul.f32 %v1796_v15, %v1796_v15  ;;  %v563_v18 = vmul.f32 %v1798_v16, %v1798_v16 }
  0xb9   : > { %617 = vadd.xlane.f32.xlu0 %v615_v17  ;;  %565 = vadd.xlane.f32.xlu2 %v563_v18  ;;  %v1299_v17 = vld [vmem:[%s452_s14] ss:$0 sm:$0xff] }
  0xba   : > { %v610_v19 = vpop.xlane.xlu1 %609  ;;  %v551_v20 = vpop.xlane.xlu0 %550 }
  0xbb   : > { %v612_v21 = vmul.f32 %v610_v19, %v1792_v10  ;;  %v560_v22 = vmul.f32 %v1792_v10, %v551_v20 }
  0xbd   : > { %v1806_v23 = vsub.f32 %v606_v2, %v612_v21  ;;  %v1808_v24 = vsub.f32 %v547_v3, %v560_v22 }
  0xbf   : > { %v616_v25 = vmul.f32 %v1806_v23, %v1806_v23  ;;  %v564_v26 = vmul.f32 %v1808_v24, %v1808_v24 }
  0xc1   : > { %619 = vadd.xlane.f32.xlu1 %v616_v25  ;;  %567 = vadd.xlane.f32.xlu2 %v564_v26  ;;  %v1300_v26 = vld [vmem:[%s535_s25] ss:$0 sm:$0xff]  ;;  %s523_s25 = scalar_lea.vmem [#allocation10], %s1090_s26 }
  0xc2   : > { %s845_s28 = sshll.u32 %s523_s25, 4  ;;  %s1879_s28 = int_to_ptr.vmem [resolvable:$true] %s845_s28 }
 0x12c   : > { %v566_v41 = vpop.xlane.xlu2 %565  ;;  %v618_v42 = vpop.xlane.xlu0 %617 }
 0x12d   : > { %v569_v43 = vmul.f32 %v566_v41, %v1792_v10  ;;  %v621_v44 = vmul.f32 %v618_v42, %v1792_v10 }
 0x12f   : > { %v571_v47 = vadd.f32 1e-05, %v569_v43  ;;  %v623_v48 = vadd.f32 1e-05, %v621_v44 }
 0x131   : > { %1305 = vrsqrt.f32 %v571_v47  ;;  %vm631_vm3 = vweird.f32 %v623_v48  ;;  %vm579_vm4 = vweird.f32 %v571_v47 }
 0x132   : > { %1307 = vrsqrt.f32 %v623_v48 }
 0x134   : > { %v620_v49 = vpop.xlane.xlu1 %619  ;;  %v568_v50 = vpop.xlane.xlu2 %567 }
 0x135   : > { %v622_v51 = vmul.f32 %v620_v49, %v1792_v10  ;;  %v570_v52 = vmul.f32 %v568_v50, %v1792_v10 }
 0x137   : > { %v1306_v53 = vpop.eup %1305  ;;  %v624_v54 = vadd.f32 1e-05, %v622_v51  ;;  %v572_v55 = vadd.f32 1e-05, %v570_v52 }
 0x138   : > { %v1308_v56 = vpop.eup %1307  ;;  %v574_v57 = vmul.f32 %v1306_v53, %v571_v47  ;;  %vm580_vm2 = vweird.f32 %v1306_v53 }
 0x139   : > { %v626_v58 = vmul.f32 %v1308_v56, %v623_v48  ;;  %1309 = vrsqrt.f32 %v624_v54  ;;  %vm632_vm1 = vweird.f32 %v1308_v56  ;;  %vm581_vm6 = vmor %vm579_vm4, %vm580_vm2  ;;  %vm641_vm9 = vweird.f32 %v624_v54 }
 0x13a   : > { %v575_v59 = vmul.f32 %v1306_v53, %v574_v57  ;;  %1311 = vrsqrt.f32 %v572_v55  ;;  %vm633_vm5 = vmor %vm631_vm3, %vm632_vm1  ;;  %vm589_vm11 = vweird.f32 %v572_v55 }
 0x13b   : > { %v627_v60 = vmul.f32 %v1308_v56, %v626_v58 }
 0x13c   : > { %v576_v61 = vmul.f32 0.5, %v575_v59 }
 0x13d   : > { %v628_v62 = vmul.f32 0.5, %v627_v60 }
 0x13e   : > { %v577_v63 = vsub.f32 1.5, %v576_v61 }
 0x13f   : > { %v1310_v0 = vpop.eup %1309  ;;  %v629_v1 = vsub.f32 1.5, %v628_v62 }
 0x140   : > { %v1312_v2 = vpop.eup %1311  ;;  %v636_v3 = vmul.f32 %v1310_v0, %v624_v54  ;;  %v578_v4 = vmul.f32 %v1306_v53, %v577_v63  ;;  %vm642_vm7 = vweird.f32 %v1310_v0 }
 0x141   : > { %v630_v5 = vmul.f32 %v1308_v56, %v629_v1  ;;  %v584_v6 = vmul.f32 %v1312_v2, %v572_v55  ;;  %vm590_vm8 = vweird.f32 %v1312_v2  ;;  %vm643_vm10 = vmor %vm641_vm9, %vm642_vm7 }
 0x142   : > { %v637_v7 = vmul.f32 %v1310_v0, %v636_v3  ;;  %v582_v12 = vsel %vm581_vm6, %v1306_v53, %v578_v4  ;;  %vm591_vm12 = vmor %vm589_vm11, %vm590_vm8 }
 0x143   : > { %v585_v8 = vmul.f32 %v1312_v2, %v584_v6  ;;  %v634_v10 = vsel %vm633_vm5, %v1308_v56, %v630_v5  ;;  %v593_v20 = vmul.f32 %v582_v12, %v1798_v16 }
 0x144   : > { %v638_v9 = vmul.f32 0.5, %v637_v7  ;;  %v645_v18 = vmul.f32 %v634_v10, %v1796_v15 }
 0x145   : > { %v586_v11 = vmul.f32 0.5, %v585_v8  ;;  %v598_v16 = vmul.f32 %v1299_v17, %v593_v20 }
 0x146   : > { %v639_v13 = vsub.f32 1.5, %v638_v9  ;;  %v647_v15 = vmul.f32 %v1299_v17, %v645_v18 }
 0x147   : > { %v587_v14 = vsub.f32 1.5, %v586_v11  ;;  %v603_v33 = vadd.f32 %v1300_v26, %v598_v16 }
 0x148   : > { %v640_v19 = vmul.f32 %v1310_v0, %v639_v13  ;;  %v649_v31 = vadd.f32 %v1300_v26, %v647_v15 }
 0x149   : > { %v588_v21 = vmul.f32 %v1312_v2, %v587_v14 }
 0x14a   : > { %v644_v22 = vsel %vm643_vm10, %v1310_v0, %v640_v19 }
 0x14b   : > { %v592_v25 = vsel %vm591_vm12, %v1312_v2, %v588_v21  ;;  %v646_v27 = vmul.f32 %v644_v22, %v1806_v23 }
 0x14c   : > { %v594_v28 = vmul.f32 %v592_v25, %v1808_v24 }
 0x14d   : > { %v648_v29 = vmul.f32 %v1299_v17, %v646_v27 }
 0x14e   : > { %v599_v30 = vmul.f32 %v1299_v17, %v594_v28 }
 0x14f   : > { %v650_v32 = vadd.f32 %v1300_v26, %v648_v29 }
 0x150   : > { %v604_v34 = vadd.f32 %v1300_v26, %v599_v30 }
 0x151   : > { %v734_v35 = vpack.c.bf16 %v650_v32, %v649_v31 }
 0x152   : > { %v651_v36 = vpack.c.bf16 %v604_v34, %v603_v33 }
 0x153   : > { %811 = vmatmul.bf16.vlgmr.msra.gmra.mxu1 %v734_v35 }
 0x154   : > { %728 = vmatmul.bf16.vlgmr.msra.gmra.mxu0 %v651_v36 }
 0x1d0   : > { %v812_v23 = vpop.f32.mrf.mxu1 }
 0x1d1   : > { %v729_v24 = vpop.f32.mrf.mxu0  ;;  %v813_v40 = vadd.f32 %v1302_v37, %v812_v23 }
 0x1d2   : > { %v730_v43 = vadd.f32 %v1301_v38, %v729_v24 }
 0x1d8   : > { %v814_v39 = vpop.f32.mrf.mxu1 }
 0x1d9   : > { %v731_v41 = vpop.f32.mrf.mxu0  ;;  %v815_v42 = vadd.f32 %v1302_v37, %v814_v39 }
 0x1da   : > { %v732_v44 = vadd.f32 %v1301_v38, %v731_v41 }
 0x1db   : > { %v1192_v45 = vpack.c.bf16 %v815_v42, %v813_v40 }
 0x1dc   : > { %v1187_v46 = vpack.c.bf16 %v732_v44, %v730_v43 }
 0x1dd   : > { %1193 = vst [vmem:[%s530_s19] sm:$0xff] %v1192_v45  }
 0x1de   : > { %1188 = vst [vmem:[%s523_s25] sm:$0xff] %v1187_v46  }
 0x1df   : > { %1490 = shalt.err (!%p1487_p3)
}
 0x1e0   : > { %s1594_s13 = smov 64   ;;  %s1595_s14 = smov 4  }
 0x1e1   : > { %1208 = dma.vmem_to_hbm [thread:$0]  (%p1730_p5), %s1879_s28, 128, %s848_s12, %s826_s24, %s1594_s13, %s1594_s13, %s1595_s14  }
 0x1e2   : > { %s831_s22 = scalar_lea.sflag [#allocation12], %s1785_s8  ;;  %s1505_s25 = sshra.s32 %s1883_s15, 4  ;;  %s1506_s25 = int_to_ptr.hbm [resolvable:$true] %s1505_s25 }
 0x1e3   : > { %s1507_s19 = scalar_lea.hbm %s1506_s25, 8  ;;  %s1511_s21 = scalar_lea.hbm %s1982_s29, 16 }
 0x1e4   : > { %p1508_p7 = scmp.ne.s32.totalorder %s1506_s25, %s1507_s19  ;;  %p1512_p1 = scmp.lt.s32.totalorder %s1506_s25, %s1982_s29 }
 0x1e5   : > { %p1513_p4 = scmp.lt.s32.totalorder %s1511_s21, %s1507_s19 }
 0x1e6   : > { %p1509_p9 = pnand %p1508_p7, %p1730_p5 }
 0x1e7   : > { %p1514_p8 = por %p1513_p4, %p1512_p1 }
 0x1e8   : > { %p1510_p2 = pneg %p1509_p9 }
 0x1ea   : > { %p1515_p10 = pnand %p1514_p8, %p1510_p2 }
 0x1ec   : > { %1518 = shalt.err (!%p1515_p10)
}
 0x1ed   : > { %1209 = dma.vmem_to_hbm [thread:$0]  (%p1730_p5), %s1881_s0, 128, %s1883_s15, %s831_s22, %s1594_s13, %s1594_s13, %s1595_s14  }
 0x1ee PF: > { %s1984_s8 = sld [smem:[#allocation18_spill]]  ;;  %p1230_p12 = pnand %p1078_p11, %p1691_p6 }
 0x1ef   : > { %s1986_s12 = sld [smem:[#allocation21_spill]] }
 0x1f0   : > { %p1231_p13 = pneg %p1230_p12 }
 0x1f4   : > { %s881_s24 = sand.u32 1, %s1984_s8  }
 0x1f5   : > { %s882_s26 = scalar_lea.sflag [#allocation4], %s881_s24 }
 0x1f6   : > { %1556 = dma.done.wait (%p1231_p13), %s882_s26, 128  }
 0x1f7   : > { %1558 = vsyncadd (%p1231_p13), %s882_s26, 4294967168  ;;  %s892_s27 = scalar_lea.sflag [#allocation12], %s881_s24 }
 0x1f8   : > { %1560 = dma.done.wait (%p1231_p13), %s892_s27, 128  }
 0x1f9   : > { %1562 = vsyncadd (%p1231_p13), %s892_s27, 4294967168  ;;  %s28_s14 = sadd.s32 1, %s1986_s12   ;;  %s1987_s0 = sld [smem:[#allocation19_spill]] }
 0x1fa   : > { %p25_p0 = scmp.ge.s32.totalorder %s28_s14, 4   ;;  %s1988_s11 = sld [smem:[#allocation25_spill]] }
 0x1fb   : > { %s1989_s12 = sld [smem:[#allocation20_spill]]  ;;  %s1991_s30 = smov %s1569_s10 }
 0x1fc   : > { %s1990_s13 = sld [smem:[#allocation23_spill]]  ;;  %27 = sbr.rel (!%p25_p0) target bundleno = 13 (0xd), region = 154 }
 0x1ff   : > { %s1992_s10 = smov %s1987_s0 }
 0x201   :  { %898 = vsyncpa [#allocation3], 1 }
 0x202   :  { %900 = vsyncpa [#allocation3 + $0x1], 1 }
 0x203   :  { %901 = vsyncpa [#allocation6], 1 }
 0x204   :  { %902 = vsyncpa [#allocation4], 1 }
 0x205   :  { %904 = vsyncpa [#allocation4 + $0x1], 1 }
 0x206   :  { %905 = vsyncpa [#allocation12], 1 }
 0x207   :  { %907 = vsyncpa [#allocation12 + $0x1], 1 }

</bundles_post_ra>
